<compile_context>
chip_gen: v5e
topology: v5e:2x2
jax: 0.10.0
libtpu: 0.0.40
codegen_flags: <defaults>
</compile_context>

<pallas_src>
import functools

import jax
import jax.numpy as jnp
from jax.experimental import pallas as pl
from jax.experimental.pallas import tpu as pltpu


# ----------------------------- Pallas kernel ------------------------------ #
def _sage_stack_kernel(at_ref, xt_ref, *refs, layer_dims):
    """Fused SAGE stack, feature-major layout.

    at_ref : (N, N)       A_mean^T (row-normalized mean aggregation, transposed)
    xt_ref : (Cin0, N)    X^T input node features
    refs   : per layer (Wl^T (Cout,Cin), Wr^T (Cout,Cin), b (Cout,1)), then o_ref
    o_ref  : (Cout_L, N)  output features, transposed
    """
    o_ref = refs[-1]
    p = refs[:-1]
    num_layers = len(layer_dims)

    at = at_ref[...]          # (N, N) resident in VMEM across all layers
    h = xt_ref[...]           # (C, N) activations, never leave VMEM

    for l in range(num_layers):
        wl_t = p[3 * l][...]        # (Cout, Cin) neighbor weight (lin_l)
        wr_t = p[3 * l + 1][...]    # (Cout, Cin) root weight     (lin_r)
        b = p[3 * l + 2][...]       # (Cout, 1)   neighbor-branch bias
        cin, cout = layer_dims[l]

        # Neighbor term: the N^2 matmul costs N^2*cin one way, N^2*cout the
        # other -> pick the cheaper association per layer.
        if cin <= cout:
            agg = jnp.dot(h, at, preferred_element_type=jnp.float32)       # (Cin, N)
            neigh = jnp.dot(wl_t, agg, preferred_element_type=jnp.float32)  # (Cout, N)
        else:
            proj = jnp.dot(wl_t, h, preferred_element_type=jnp.float32)     # (Cout, N)
            neigh = jnp.dot(proj, at, preferred_element_type=jnp.float32)   # (Cout, N)

        root = jnp.dot(wr_t, h, preferred_element_type=jnp.float32)         # (Cout, N)
        y = neigh + root + b          # bias broadcasts along lanes (N)

        if l < num_layers - 1:
            y = jnp.maximum(y, 0.0)   # ReLU on hidden layers
            # TODO(synk): F.dropout skipped (inference mode -> identity).
        h = y

    o_ref[...] = h.astype(o_ref.dtype)


# ------------------------------- wrapper ----------------------------------- #
def sage_forward(x, adj, params):
    """SAGE.forward: all layers fused into a single Pallas call.

    x:   (N, Cin)  node features
    adj: (N, N)    binary adjacency (adj[i, j] = 1 iff j is a neighbor of i)
    params: list of (wl (Cin,Cout), wr (Cin,Cout), b (Cout,)) per layer
    returns (N, Cout_last)
    """
    n, _ = x.shape

    # Mean aggregation matrix (dense glue, plain JAX). Transposed for the
    # feature-major kernel layout; zero-degree rows aggregate to 0.
    deg = adj.sum(axis=1)
    a_mean = adj / jnp.maximum(deg, 1.0)[:, None]
    at = a_mean.T                     # (N, N)
    xt = x.T                          # (Cin0, N)

    layer_dims = []
    flat_params = []
    for (wl, wr, b) in params:
        ci, co = wl.shape
        layer_dims.append((ci, co))
        flat_params += [wl.T, wr.T, b.reshape(co, 1)]
    cout_last = layer_dims[-1][1]

    kernel = functools.partial(_sage_stack_kernel, layer_dims=tuple(layer_dims))

    def _full(shape):                 # whole-array resident block, grid=(1,)
        return pl.BlockSpec(shape, lambda i: (0, 0))

    in_specs = [_full(at.shape), _full(xt.shape)]
    in_specs += [_full(a.shape) for a in flat_params]

    out_t = pl.pallas_call(
        kernel,
        out_shape=jax.ShapeDtypeStruct((cout_last, n), jnp.float32),
        grid_spec=pltpu.PrefetchScalarGridSpec(
            num_scalar_prefetch=0,
            grid=(1,),
            in_specs=in_specs,
            out_specs=_full((cout_last, n)),
        ),
        compiler_params=pltpu.CompilerParams(
            dimension_semantics=("arbitrary",),
        ),
    )(at, xt, *flat_params)

    return out_t.T                    # back to node-major (N, Cout)


# ----------------------------- reference & init ---------------------------- #
def sage_forward_reference(x, adj, params):
    """Pure-JAX reference (node-major) for correctness checking."""
    deg = adj.sum(axis=1)
    a_mean = adj / jnp.maximum(deg, 1.0)[:, None]
    h = x
    for i, (wl, wr, b) in enumerate(params):
        y = (a_mean @ h) @ wl + b + h @ wr
        if i < len(params) - 1:
            y = jnp.maximum(y, 0.0)
        h = y
    return h


def init_sage_params(key, in_channels, hidden_channels, out_channels, num_layers):
    """Glorot-style init matching SAGEConv parameter shapes (lin_l w+b, lin_r w)."""
    dims = (
        [(in_channels, hidden_channels)]
        + [(hidden_channels, hidden_channels)] * (num_layers - 2)
        + [(hidden_channels, out_channels)]
    )
    params = []
    for (ci, co) in dims:
        key, k1, k2 = jax.random.split(key, 3)
        scale = jnp.sqrt(6.0 / (ci + co))
        wl = jax.random.uniform(k1, (ci, co), jnp.float32, -scale, scale)
        wr = jax.random.uniform(k2, (ci, co), jnp.float32, -scale, scale)
        b = jnp.zeros((co,), jnp.float32)
        params.append((wl, wr, b))
    return params


# ---------------------------------- main ----------------------------------- #
if __name__ == "__main__":
    key = jax.random.PRNGKey(0)

    # Small synthetic problem: 128 nodes, 16 -> 32 -> 32 -> 8 channels.
    N = 128
    in_channels, hidden_channels, out_channels = 16, 32, 8
    num_layers = 3
    dropout = 0.5  # unused in eval mode

    key, kx, ka, kp = jax.random.split(key, 4)
    x = jax.random.normal(kx, (N, in_channels), jnp.float32)

    # Random symmetric binary adjacency (~8% edge density), no self loops.
    raw = jax.random.uniform(ka, (N, N))
    adj = (raw < 0.08).astype(jnp.float32)
    adj = jnp.maximum(adj, adj.T)
    adj = adj * (1.0 - jnp.eye(N, dtype=jnp.float32))

    params = init_sage_params(kp, in_channels, hidden_channels, out_channels,
                              num_layers)

    out = sage_forward(x, adj, params)
    out = jax.block_until_ready(out)

    assert out.shape == (N, out_channels), out.shape
    assert jnp.all(jnp.isfinite(out))

    ref = sage_forward_reference(x, adj, params)
    assert jnp.allclose(out, ref, rtol=1e-3, atol=1e-3), float(
        jnp.max(jnp.abs(out - ref)))

    print("KERNEL_OK")
</pallas_src>

<mosaic_0001>
module attributes {stable_mosaic.version = 11 : i64} {
  func.func @_sage_stack_kernel(%arg0: i32, %arg1: memref<128x128xf32, #tpu.memory_space<vmem>>, %arg2: memref<16x128xf32, #tpu.memory_space<vmem>>, %arg3: memref<32x16xf32, #tpu.memory_space<vmem>>, %arg4: memref<32x16xf32, #tpu.memory_space<vmem>>, %arg5: memref<32x1xf32, #tpu.memory_space<vmem>>, %arg6: memref<32x32xf32, #tpu.memory_space<vmem>>, %arg7: memref<32x32xf32, #tpu.memory_space<vmem>>, %arg8: memref<32x1xf32, #tpu.memory_space<vmem>>, %arg9: memref<8x32xf32, #tpu.memory_space<vmem>>, %arg10: memref<8x32xf32, #tpu.memory_space<vmem>>, %arg11: memref<8x1xf32, #tpu.memory_space<vmem>>, %arg12: memref<8x128xf32, #tpu.memory_space<vmem>>) attributes {dimension_semantics = [#tpu.dimension_semantics<arbitrary>], iteration_bounds = array<i64: 1>, scalar_prefetch = 0 : i64, scratch_operands = 0 : i64, tpu.core_type = #tpu.core_type<tc>, window_params = [{pipeline_mode = #tpu.pipeline_mode<synchronous>, transform_indices = @transform_0, window_bounds = array<i64: 128, 128>}, {pipeline_mode = #tpu.pipeline_mode<synchronous>, transform_indices = @transform_1, window_bounds = array<i64: 16, 128>}, {pipeline_mode = #tpu.pipeline_mode<synchronous>, transform_indices = @transform_2, window_bounds = array<i64: 32, 16>}, {pipeline_mode = #tpu.pipeline_mode<synchronous>, transform_indices = @transform_3, window_bounds = array<i64: 32, 16>}, {pipeline_mode = #tpu.pipeline_mode<synchronous>, transform_indices = @transform_4, window_bounds = array<i64: 32, 1>}, {pipeline_mode = #tpu.pipeline_mode<synchronous>, transform_indices = @transform_5, window_bounds = array<i64: 32, 32>}, {pipeline_mode = #tpu.pipeline_mode<synchronous>, transform_indices = @transform_6, window_bounds = array<i64: 32, 32>}, {pipeline_mode = #tpu.pipeline_mode<synchronous>, transform_indices = @transform_7, window_bounds = array<i64: 32, 1>}, {pipeline_mode = #tpu.pipeline_mode<synchronous>, transform_indices = @transform_8, window_bounds = array<i64: 8, 32>}, {pipeline_mode = #tpu.pipeline_mode<synchronous>, transform_indices = @transform_9, window_bounds = array<i64: 8, 32>}, {pipeline_mode = #tpu.pipeline_mode<synchronous>, transform_indices = @transform_10, window_bounds = array<i64: 8, 1>}, {pipeline_mode = #tpu.pipeline_mode<synchronous>, transform_indices = @transform_11, window_bounds = array<i64: 8, 128>}]} {
    %c0 = arith.constant 0 : index
    %c0_0 = arith.constant 0 : index
    %0 = vector.load %arg1[%c0, %c0_0] : memref<128x128xf32, #tpu.memory_space<vmem>>, vector<128x128xf32>
    %c0_1 = arith.constant 0 : index
    %c0_2 = arith.constant 0 : index
    %1 = vector.load %arg2[%c0_1, %c0_2] : memref<16x128xf32, #tpu.memory_space<vmem>>, vector<16x128xf32>
    %c0_3 = arith.constant 0 : index
    %c0_4 = arith.constant 0 : index
    %2 = vector.load %arg3[%c0_3, %c0_4] : memref<32x16xf32, #tpu.memory_space<vmem>>, vector<32x16xf32>
    %c0_5 = arith.constant 0 : index
    %c0_6 = arith.constant 0 : index
    %3 = vector.load %arg4[%c0_5, %c0_6] : memref<32x16xf32, #tpu.memory_space<vmem>>, vector<32x16xf32>
    %c0_7 = arith.constant 0 : index
    %c0_8 = arith.constant 0 : index
    %4 = vector.load %arg5[%c0_7, %c0_8] : memref<32x1xf32, #tpu.memory_space<vmem>>, vector<32x1xf32>
    %cst = arith.constant dense<0.000000e+00> : vector<16x128xf32>
    %5 = tpu.matmul %1, %0, %cst {dimension_numbers = #tpu.dot_dimension_numbers<[1], [0], [0], [1], [0, 0, 1, 1], [], []>} : vector<16x128xf32>, vector<128x128xf32>, vector<16x128xf32> -> vector<16x128xf32>
    %cst_9 = arith.constant dense<0.000000e+00> : vector<32x128xf32>
    %6 = tpu.matmul %2, %5, %cst_9 {dimension_numbers = #tpu.dot_dimension_numbers<[1], [0], [0], [1], [0, 0, 1, 1], [], []>} : vector<32x16xf32>, vector<16x128xf32>, vector<32x128xf32> -> vector<32x128xf32>
    %cst_10 = arith.constant dense<0.000000e+00> : vector<32x128xf32>
    %7 = tpu.matmul %3, %1, %cst_10 {dimension_numbers = #tpu.dot_dimension_numbers<[1], [0], [0], [1], [0, 0, 1, 1], [], []>} : vector<32x16xf32>, vector<16x128xf32>, vector<32x128xf32> -> vector<32x128xf32>
    %8 = arith.addf %6, %7 : vector<32x128xf32>
    %9 = vector.broadcast %4 : vector<32x1xf32> to vector<32x128xf32>
    %10 = arith.addf %8, %9 : vector<32x128xf32>
    %cst_11 = arith.constant 0.000000e+00 : f32
    %11 = vector.broadcast %cst_11 : f32 to vector<32x128xf32>
    %12 = arith.maximumf %10, %11 : vector<32x128xf32>
    %c0_12 = arith.constant 0 : index
    %c0_13 = arith.constant 0 : index
    %13 = vector.load %arg6[%c0_12, %c0_13] : memref<32x32xf32, #tpu.memory_space<vmem>>, vector<32x32xf32>
    %c0_14 = arith.constant 0 : index
    %c0_15 = arith.constant 0 : index
    %14 = vector.load %arg7[%c0_14, %c0_15] : memref<32x32xf32, #tpu.memory_space<vmem>>, vector<32x32xf32>
    %c0_16 = arith.constant 0 : index
    %c0_17 = arith.constant 0 : index
    %15 = vector.load %arg8[%c0_16, %c0_17] : memref<32x1xf32, #tpu.memory_space<vmem>>, vector<32x1xf32>
    %cst_18 = arith.constant dense<0.000000e+00> : vector<32x128xf32>
    %16 = tpu.matmul %12, %0, %cst_18 {dimension_numbers = #tpu.dot_dimension_numbers<[1], [0], [0], [1], [0, 0, 1, 1], [], []>} : vector<32x128xf32>, vector<128x128xf32>, vector<32x128xf32> -> vector<32x128xf32>
    %cst_19 = arith.constant dense<0.000000e+00> : vector<32x128xf32>
    %17 = tpu.matmul %13, %16, %cst_19 {dimension_numbers = #tpu.dot_dimension_numbers<[1], [0], [0], [1], [0, 0, 1, 1], [], []>} : vector<32x32xf32>, vector<32x128xf32>, vector<32x128xf32> -> vector<32x128xf32>
    %cst_20 = arith.constant dense<0.000000e+00> : vector<32x128xf32>
    %18 = tpu.matmul %14, %12, %cst_20 {dimension_numbers = #tpu.dot_dimension_numbers<[1], [0], [0], [1], [0, 0, 1, 1], [], []>} : vector<32x32xf32>, vector<32x128xf32>, vector<32x128xf32> -> vector<32x128xf32>
    %19 = arith.addf %17, %18 : vector<32x128xf32>
    %20 = vector.broadcast %15 : vector<32x1xf32> to vector<32x128xf32>
    %21 = arith.addf %19, %20 : vector<32x128xf32>
    %cst_21 = arith.constant 0.000000e+00 : f32
    %22 = vector.broadcast %cst_21 : f32 to vector<32x128xf32>
    %23 = arith.maximumf %21, %22 : vector<32x128xf32>
    %c0_22 = arith.constant 0 : index
    %c0_23 = arith.constant 0 : index
    %24 = vector.load %arg9[%c0_22, %c0_23] : memref<8x32xf32, #tpu.memory_space<vmem>>, vector<8x32xf32>
    %c0_24 = arith.constant 0 : index
    %c0_25 = arith.constant 0 : index
    %25 = vector.load %arg10[%c0_24, %c0_25] : memref<8x32xf32, #tpu.memory_space<vmem>>, vector<8x32xf32>
    %c0_26 = arith.constant 0 : index
    %c0_27 = arith.constant 0 : index
    %26 = vector.load %arg11[%c0_26, %c0_27] : memref<8x1xf32, #tpu.memory_space<vmem>>, vector<8x1xf32>
    %cst_28 = arith.constant dense<0.000000e+00> : vector<8x128xf32>
    %27 = tpu.matmul %24, %23, %cst_28 {dimension_numbers = #tpu.dot_dimension_numbers<[1], [0], [0], [1], [0, 0, 1, 1], [], []>} : vector<8x32xf32>, vector<32x128xf32>, vector<8x128xf32> -> vector<8x128xf32>
    %cst_29 = arith.constant dense<0.000000e+00> : vector<8x128xf32>
    %28 = tpu.matmul %27, %0, %cst_29 {dimension_numbers = #tpu.dot_dimension_numbers<[1], [0], [0], [1], [0, 0, 1, 1], [], []>} : vector<8x128xf32>, vector<128x128xf32>, vector<8x128xf32> -> vector<8x128xf32>
    %cst_30 = arith.constant dense<0.000000e+00> : vector<8x128xf32>
    %29 = tpu.matmul %25, %23, %cst_30 {dimension_numbers = #tpu.dot_dimension_numbers<[1], [0], [0], [1], [0, 0, 1, 1], [], []>} : vector<8x32xf32>, vector<32x128xf32>, vector<8x128xf32> -> vector<8x128xf32>
    %30 = arith.addf %28, %29 : vector<8x128xf32>
    %31 = vector.broadcast %26 : vector<8x1xf32> to vector<8x128xf32>
    %32 = arith.addf %30, %31 : vector<8x128xf32>
    %c0_31 = arith.constant 0 : index
    %c0_32 = arith.constant 0 : index
    %33 = vector.load %arg12[%c0_31, %c0_32] : memref<8x128xf32, #tpu.memory_space<vmem>>, vector<8x128xf32>
    tpu.vector_store %arg12[%c0_31, %c0_32], %32 {strides = array<i32>} : memref<8x128xf32, #tpu.memory_space<vmem>>, vector<8x128xf32>,
    return
  }
  func.func @transform_0(%arg0: i32) -> (i32, i32) {
    %c0_i32 = arith.constant 0 : i32
    %c0_i32_0 = arith.constant 0 : i32
    %c0_i32_1 = arith.constant 0 : i32
    return %c0_i32, %c0_i32_0 : i32, i32
  }
  func.func @transform_1(%arg0: i32) -> (i32, i32) {
    %c0_i32 = arith.constant 0 : i32
    %c0_i32_0 = arith.constant 0 : i32
    %c0_i32_1 = arith.constant 0 : i32
    return %c0_i32, %c0_i32_0 : i32, i32
  }
  func.func @transform_2(%arg0: i32) -> (i32, i32) {
    %c0_i32 = arith.constant 0 : i32
    %c0_i32_0 = arith.constant 0 : i32
    %c0_i32_1 = arith.constant 0 : i32
    return %c0_i32, %c0_i32_0 : i32, i32
  }
  func.func @transform_3(%arg0: i32) -> (i32, i32) {
    %c0_i32 = arith.constant 0 : i32
    %c0_i32_0 = arith.constant 0 : i32
    %c0_i32_1 = arith.constant 0 : i32
    return %c0_i32, %c0_i32_0 : i32, i32
  }
  func.func @transform_4(%arg0: i32) -> (i32, i32) {
    %c0_i32 = arith.constant 0 : i32
    %c0_i32_0 = arith.constant 0 : i32
    %c0_i32_1 = arith.constant 0 : i32
    return %c0_i32, %c0_i32_0 : i32, i32
  }
  func.func @transform_5(%arg0: i32) -> (i32, i32) {
    %c0_i32 = arith.constant 0 : i32
    %c0_i32_0 = arith.constant 0 : i32
    %c0_i32_1 = arith.constant 0 : i32
    return %c0_i32, %c0_i32_0 : i32, i32
  }
  func.func @transform_6(%arg0: i32) -> (i32, i32) {
    %c0_i32 = arith.constant 0 : i32
    %c0_i32_0 = arith.constant 0 : i32
    %c0_i32_1 = arith.constant 0 : i32
    return %c0_i32, %c0_i32_0 : i32, i32
  }
  func.func @transform_7(%arg0: i32) -> (i32, i32) {
    %c0_i32 = arith.constant 0 : i32
    %c0_i32_0 = arith.constant 0 : i32
    %c0_i32_1 = arith.constant 0 : i32
    return %c0_i32, %c0_i32_0 : i32, i32
  }
  func.func @transform_8(%arg0: i32) -> (i32, i32) {
    %c0_i32 = arith.constant 0 : i32
    %c0_i32_0 = arith.constant 0 : i32
    %c0_i32_1 = arith.constant 0 : i32
    return %c0_i32, %c0_i32_0 : i32, i32
  }
  func.func @transform_9(%arg0: i32) -> (i32, i32) {
    %c0_i32 = arith.constant 0 : i32
    %c0_i32_0 = arith.constant 0 : i32
    %c0_i32_1 = arith.constant 0 : i32
    return %c0_i32, %c0_i32_0 : i32, i32
  }
  func.func @transform_10(%arg0: i32) -> (i32, i32) {
    %c0_i32 = arith.constant 0 : i32
    %c0_i32_0 = arith.constant 0 : i32
    %c0_i32_1 = arith.constant 0 : i32
    return %c0_i32, %c0_i32_0 : i32, i32
  }
  func.func @transform_11(%arg0: i32) -> (i32, i32) {
    %c0_i32 = arith.constant 0 : i32
    %c0_i32_0 = arith.constant 0 : i32
    %c0_i32_1 = arith.constant 0 : i32
    return %c0_i32, %c0_i32_0 : i32, i32
  }
}

</mosaic_0001>

<bundles_post_ra>
// kernel: tpu_custom_call.1
= control target key start
LH: loop header
LB: loop body
LE: loop exit
PB: predicated region body
PF: predicated region fallthrough
CT: control target
= control target key end

     0   :  { %16 = vsyncpa [#allocation3], 0  ;;  %s718_s0 = inlined_call_operand.hbm [shape: f32[128,128], index: 0, kind: input, shape index: {}]   ;;  %s719_s1 = inlined_call_operand.vmem [shape: f32[16,128], index: 1, kind: input, shape index: {}]   ;;  %s720_s2 = inlined_call_operand.vmem [shape: f32[32,16], index: 2, kind: input, shape index: {}]   ;;  %s721_s3 = inlined_call_operand.vmem [shape: f32[32,16], index: 3, kind: input, shape index: {}]   ;;  %s722_s4 = inlined_call_operand.vmem [shape: f32[32,1], index: 4, kind: input, shape index: {}]   ;;  %s723_s5 = inlined_call_operand.vmem [shape: f32[32,32], index: 5, kind: input, shape index: {}]   ;;  %s724_s6 = inlined_call_operand.vmem [shape: f32[32,32], index: 6, kind: input, shape index: {}]   ;;  %s725_s7 = inlined_call_operand.vmem [shape: f32[32,1], index: 7, kind: input, shape index: {}]   ;;  %s726_s8 = inlined_call_operand.vmem [shape: f32[8,32], index: 8, kind: input, shape index: {}]   ;;  %s727_s9 = inlined_call_operand.vmem [shape: f32[8,32], index: 9, kind: input, shape index: {}]   ;;  %s728_s10 = inlined_call_operand.vmem [shape: f32[8,1], index: 10, kind: input, shape index: {}]   ;;  %s729_s11 = inlined_call_operand.hbm [shape: f32[8,128], index: 11, kind: output, shape index: {}]  }
   0x1   :  { %17 = vsyncpa [#allocation4], 0  ;;  %s22_s19 = sshll.u32 %s718_s0, 4  ;;  %s542_s20 = smov [#allocation2]   ;;  %s23_s19 = int_to_ptr.hbm [resolvable:$true] %s22_s19 }
   0x2   :  { %s24_s21 = sshll.u32 %s542_s20, 4  ;;  %s543_s22 = smov 128   ;;  %s25_s21 = int_to_ptr.vmem [resolvable:$true] %s24_s21 }
   0x3   :  { %s544_s23 = smov 8  }
   0x4   :  { %30 = dma.hbm_to_vmem [thread:$0]  %s23_s19, 2048, %s25_s21, [#allocation3], %s543_s22, %s543_s22, %s544_s23  }
   0x5   :  { %538 = dma.done.wait [#allocation3], 2048  }
   0x6   :  { %539 = vsyncadd [#allocation3], 4294965248  ;;  %v70_v0 = vld [vmem:[#allocation2 + $0x78] sm:$0xff]  ;;  %v69_v1 = vld [vmem:[#allocation2 + $0x70] sm:$0xff]  ;;  %vm108_vm0 = vcmask 130048   ;;  %v545_v20 = vmov 0  }
   0x7   :  { %85 = vmatpush.msra.mxu0 %v70_v0  ;;  %231 = vmatpush.msra.mxu3 %v70_v0  ;;  %v68_v2 = vld [vmem:[#allocation2 + $0x68] sm:$0xff]  ;;  %v67_v3 = vld [vmem:[#allocation2 + $0x60] sm:$0xff]  ;;  %v66_v5 = vld [vmem:[#allocation2 + $0x58] sm:$0xff]  ;;  %vm260_vm1 = vcmask 261120   ;;  %s546_s29 = smov [#allocation5]   ;;  %s454_s12 = sshll.u32 %s729_s11, 4  ;;  %s455_s12 = int_to_ptr.hbm [resolvable:$true] %s454_s12 }
   0x8   :  { %v72_v4 = vld [vmem:[%s719_s1 + $0x8] sm:$0xff]  ;;  %v71_v6 = vld [vmem:[%s719_s1] sm:$0xff]  ;;  %v65_v7 = vld [vmem:[#allocation2 + $0x50] sm:$0xff]  ;;  %487 = vset.pattern.permute.xlu0 %v545_v20  ;;  %488 = vset.pattern.permute.xlu1 %v545_v20  ;;  %s452_s30 = sshll.u32 %s546_s29, 4  ;;  %s453_s30 = int_to_ptr.vmem [resolvable:$true] %s452_s30 }
   0x9   :  { %86 = vmatpush.msra.mxu0 %v69_v1  ;;  %232 = vmatpush.msra.mxu3 %v69_v1  ;;  %v64_v8 = vld [vmem:[#allocation2 + $0x48] sm:$0xff]  ;;  %v63_v9 = vld [vmem:[#allocation2 + $0x40] sm:$0xff]  ;;  %v62_v10 = vld [vmem:[#allocation2 + $0x38] sm:$0xff] }
   0xa   :  { %135 = vmatpush.msra.mxu1 %v72_v4  ;;  %v61_v11 = vld [vmem:[#allocation2 + $0x30] sm:$0xff]  ;;  %v60_v12 = vld [vmem:[#allocation2 + $0x28] sm:$0xff]  ;;  %v59_v13 = vld [vmem:[#allocation2 + $0x20] sm:$0xff]  ;;  %489 = vset.pattern.permute.xlu2 %v545_v20 }
   0xb   :  { %87 = vmatpush.msra.mxu0 %v68_v2  ;;  %233 = vmatpush.msra.mxu3 %v68_v2  ;;  %v58_v14 = vld [vmem:[#allocation2 + $0x18] sm:$0xff]  ;;  %v57_v15 = vld [vmem:[#allocation2 + $0x10] sm:$0xff]  ;;  %v56_v16 = vld [vmem:[#allocation2 + $0x8] sm:$0xff] }
   0xc   :  { %136 = vmatpush.msra.mxu1 %v71_v6  ;;  %v55_v17 = vld [vmem:[#allocation2] sm:$0xff]  ;;  %v82_v21 = vld [vmem:[%s722_s4 + $0x8] sm:$0xff]  ;;  %v83_v23 = vld [vmem:[%s722_s4 + $0x10] sm:$0xff] }
   0xd   :  { %88 = vmatpush.msra.mxu0 %v67_v3  ;;  %234 = vmatpush.msra.mxu3 %v67_v3  ;;  %v81_v18 = vld [vmem:[%s722_s4] sm:$0xff]  ;;  %v78_v22 = vld [vmem:[%s721_s3 + $0x8] sm:$0xff]  ;;  %v79_v25 = vld [vmem:[%s721_s3 + $0x10] sm:$0xff] }
   0xe   :  { %v77_v19 = vld [vmem:[%s721_s3] sm:$0xff]  ;;  %193 = vperm.xlu0 %487, %v81_v18   ;;  %v228_v24 = vld [vmem:[%s725_s7 + $0x8] sm:$0xff]  ;;  %203 = vperm.xlu1 %488, %v83_v23   ;;  %v84_v27 = vld [vmem:[%s722_s4 + $0x18] sm:$0xff] }
   0xf   :  { %89 = vmatpush.msra.mxu0 %v66_v5  ;;  %235 = vmatpush.msra.mxu3 %v66_v5  ;;  %v80_v28 = vld [vmem:[%s721_s3 + $0x18] sm:$0xff]  ;;  %v73_v30 = vld [vmem:[%s720_s2] sm:$0xff]  ;;  %v74_v32 = vld [vmem:[%s720_s2 + $0x8] sm:$0xff] }
  0x10   :  { %464 = vmatmul.msk.f32.vlgmr.msra.gmra.mxu1 %vm108_vm0, %v77_v19  ;;  %v227_v31 = vld [vmem:[%s725_s7] sm:$0xff]  ;;  %v75_v33 = vld [vmem:[%s720_s2 + $0x10] sm:$0xff]  ;;  %v76_v34 = vld [vmem:[%s720_s2 + $0x18] sm:$0xff] }
  0x11   :  { %90 = vmatpush.msra.mxu0 %v65_v7  ;;  %236 = vmatpush.msra.mxu3 %v65_v7  ;;  %v223_v60 = vld [vmem:[%s724_s6] sm:$0xff]  ;;  %v224_v62 = vld [vmem:[%s724_s6 + $0x8] sm:$0xff] }
  0x13   :  { %91 = vmatpush.msra.mxu0 %v64_v8  ;;  %237 = vmatpush.msra.mxu3 %v64_v8 }
  0x15   :  { %92 = vmatpush.msra.mxu0 %v63_v9  ;;  %238 = vmatpush.msra.mxu3 %v63_v9 }
  0x16   :  { %198 = vperm.xlu0 %487, %v82_v21   ;;  %208 = vperm.xlu1 %488, %v84_v27  }
  0x17   :  { %93 = vmatpush.msra.mxu0 %v62_v10  ;;  %239 = vmatpush.msra.mxu3 %v62_v10 }
  0x18   :  { %465 = vmatmul.msk.f32.gmra.mxu1 %vm108_vm0, %v78_v22 }
  0x19   :  { %94 = vmatpush.msra.mxu0 %v61_v11  ;;  %240 = vmatpush.msra.mxu3 %v61_v11 }
  0x1b   :  { %95 = vmatpush.msra.mxu0 %v60_v12  ;;  %241 = vmatpush.msra.mxu3 %v60_v12 }
  0x1d   :  { %96 = vmatpush.msra.mxu0 %v59_v13  ;;  %242 = vmatpush.msra.mxu3 %v59_v13 }
  0x1e   :  { %350 = vperm.xlu0 %487, %v228_v24   ;;  %345 = vperm.xlu1 %488, %v227_v31  }
  0x1f   :  { %97 = vmatpush.msra.mxu0 %v58_v14  ;;  %243 = vmatpush.msra.mxu3 %v58_v14 }
  0x20   :  { %466 = vmatmul.msk.f32.gmra.mxu1 %vm108_vm0, %v79_v25 }
  0x21   :  { %98 = vmatpush.msra.mxu0 %v57_v15  ;;  %244 = vmatpush.msra.mxu3 %v57_v15 }
  0x23   :  { %99 = vmatpush.msra.mxu0 %v56_v16  ;;  %245 = vmatpush.msra.mxu3 %v56_v16 }
  0x25   :  { %100 = vmatpush.msra.mxu0 %v55_v17  ;;  %246 = vmatpush.msra.mxu3 %v55_v17 }
  0x26   :  { %101 = vmatmul.f32.vlgmr.msra.gmra.mxu0 %v71_v6  ;;  %v220_v6 = vld [vmem:[%s723_s5 + $0x8] sm:$0xff] }
  0x27   :  { %420 = vmatpush.msrb.mxu3 %v70_v0  ;;  %v225_v0 = vld [vmem:[%s724_s6 + $0x10] sm:$0xff] }
  0x28   :  { %467 = vmatmul.msk.f32.gmra.mxu1 %vm108_vm0, %v80_v28 }
  0x29   :  { %421 = vmatpush.msrb.mxu3 %v69_v1 }
  0x2b   :  { %422 = vmatpush.msrb.mxu3 %v68_v2  ;;  %v226_v2 = vld [vmem:[%s724_s6 + $0x18] sm:$0xff] }
  0x2d   :  { %423 = vmatpush.msrb.mxu3 %v67_v3  ;;  %v230_v3 = vld [vmem:[%s725_s7 + $0x18] sm:$0xff] }
  0x2e   :  { %104 = vmatmul.f32.gmra.mxu0 %v72_v4  ;;  %360 = vperm.xlu2 %489, %v230_v3   ;;  %v219_v4 = vld [vmem:[%s723_s5] sm:$0xff] }
  0x2f   :  { %424 = vmatpush.msrb.mxu3 %v66_v5  ;;  %v229_v5 = vld [vmem:[%s725_s7 + $0x10] sm:$0xff] }
  0x31   :  { %425 = vmatpush.msrb.mxu3 %v65_v7  ;;  %v373_v7 = vld [vmem:[%s728_s10] sm:$0xff] }
  0x33   :  { %426 = vmatpush.msrb.mxu3 %v64_v8  ;;  %v221_v8 = vld [vmem:[%s723_s5 + $0x10] sm:$0xff] }
  0x35   :  { %427 = vmatpush.msrb.mxu3 %v63_v9  ;;  %v222_v9 = vld [vmem:[%s723_s5 + $0x18] sm:$0xff] }
  0x36   :  { %355 = vperm.xlu2 %489, %v229_v5  }
  0x37   :  { %428 = vmatpush.msrb.mxu3 %v62_v10 }
  0x39   :  { %429 = vmatpush.msrb.mxu3 %v61_v11 }
  0x3b   :  { %430 = vmatpush.msrb.mxu3 %v60_v12 }
  0x3d   :  { %431 = vmatpush.msrb.mxu3 %v59_v13 }
  0x3e   :  { %442 = vperm.xlu2 %489, %v373_v7  }
  0x3f   :  { %432 = vmatpush.msrb.mxu3 %v58_v14 }
  0x41   :  { %433 = vmatpush.msrb.mxu3 %v57_v15 }
  0x43   :  { %434 = vmatpush.msrb.mxu3 %v56_v16 }
  0x45   :  { %435 = vmatpush.msrb.mxu3 %v55_v17 }
  0x80   :  { %v194_v36 = vpop.permute.xlu0 %193  ;;  %v204_v48 = vpop.permute.xlu1 %203 }
  0x88   :  { %v199_v44 = vpop.permute.xlu0 %198  ;;  %v209_v56 = vpop.permute.xlu1 %208 }
  0x89   :  { %v361_v16 = vpop.permute.xlu2 %360 }
  0x8d   :  { %v138_v35 = vpop.f32.mrf.mxu1 }
  0x91   :  { %v356_v22 = vpop.permute.xlu2 %355 }
  0x95   :  { %v141_v39 = vpop.f32.mrf.mxu1 }
  0x9d   :  { %v144_v46 = vpop.f32.mrf.mxu1 }
  0xa3   :  { %v102_v26 = vpop.f32.mrf.mxu0 }
  0xa5   :  { %v147_v53 = vpop.f32.mrf.mxu1 }
  0xab   :  { %v105_v29 = vpop.f32.mrf.mxu0 }
  0xac   :  { %176 = vmatpush.msra.mxu2 %v105_v29  ;;  %v346_v29 = vpop.permute.xlu1 %345 }
  0xae   :  { %177 = vmatpush.msra.mxu2 %v102_v26  ;;  %v351_v26 = vpop.permute.xlu0 %350 }
  0xaf   :  { %468 = vmatmul.msk.f32.vlgmr.msra.gmra.mxu2 %vm108_vm0, %v73_v30 }
  0xb7   :  { %469 = vmatmul.msk.f32.gmra.mxu2 %vm108_vm0, %v74_v32 }
  0xbf   :  { %470 = vmatmul.msk.f32.gmra.mxu2 %vm108_vm0, %v75_v33 }
  0xc7   :  { %471 = vmatmul.msk.f32.gmra.mxu2 %vm108_vm0, %v76_v34  ;;  %v371_v34 = vld [vmem:[%s726_s8] sm:$0xff] }
 0x132   :  { %v179_v37 = vpop.f32.mrf.mxu2 }
 0x133   :  { %v180_v38 = vadd.f32 %v179_v37, %v138_v35  ;;  %v372_v35 = vld [vmem:[%s727_s9] sm:$0xff] }
 0x135   :  { %v211_v40 = vadd.f32 %v194_v36, %v180_v38 }
 0x137   :  { %v215_v41 = vmax.f32 %v211_v40, 0.0  ;;  %v443_v40 = vpop.permute.xlu2 %442 }
 0x139   :  { %247 = vmatmul.f32.vlgmr.msra.gmra.mxu3 %v215_v41 }
 0x13a   :  { %v182_v42 = vpop.f32.mrf.mxu2 }
 0x13b   :  { %v183_v43 = vadd.f32 %v182_v42, %v141_v39 }
 0x13d   :  { %v212_v45 = vadd.f32 %v199_v44, %v183_v43 }
 0x13f   :  { %v216_v47 = vmax.f32 %v212_v45, 0.0 }
 0x141   :  { %250 = vmatmul.f32.gmra.mxu3 %v216_v47 }
 0x142   :  { %v185_v49 = vpop.f32.mrf.mxu2 }
 0x143   :  { %v186_v50 = vadd.f32 %v185_v49, %v144_v46 }
 0x145   :  { %v213_v51 = vadd.f32 %v204_v48, %v186_v50 }
 0x147   :  { %v217_v52 = vmax.f32 %v213_v51, 0.0 }
 0x149   :  { %253 = vmatmul.f32.gmra.mxu3 %v217_v52 }
 0x14a   :  { %v188_v54 = vpop.f32.mrf.mxu2 }
 0x14b   :  { %v189_v55 = vadd.f32 %v188_v54, %v147_v53 }
 0x14d   :  { %v214_v57 = vadd.f32 %v209_v56, %v189_v55 }
 0x14f   :  { %v218_v58 = vmax.f32 %v214_v57, 0.0 }
 0x151   :  { %256 = vmatmul.f32.gmra.mxu3 %v218_v58  ;;  %285 = vmatpush.msrb.mxu1 %v218_v58 }
 0x153   :  { %286 = vmatpush.msrb.mxu1 %v217_v52 }
 0x155   :  { %287 = vmatpush.msrb.mxu1 %v216_v47 }
 0x157   :  { %288 = vmatpush.msrb.mxu1 %v215_v41 }
 0x158   :  { %472 = vmatmul.msk.f32.vlgmr.msrb.gmra.mxu1 %vm260_vm1, %v223_v60 }
 0x160   :  { %473 = vmatmul.msk.f32.gmra.mxu1 %vm260_vm1, %v224_v62 }
 0x168   :  { %474 = vmatmul.msk.f32.gmra.mxu1 %vm260_vm1, %v225_v0 }
 0x170   :  { %475 = vmatmul.msk.f32.gmra.mxu1 %vm260_vm1, %v226_v2 }
 0x1bc   :  { %v248_v59 = vpop.f32.mrf.mxu3 }
 0x1c4   :  { %v251_v61 = vpop.f32.mrf.mxu3 }
 0x1cc   :  { %v254_v63 = vpop.f32.mrf.mxu3 }
 0x1d4   :  { %v257_v1 = vpop.f32.mrf.mxu3 }
 0x1d5   :  { %326 = vmatpush.msrb.mxu2 %v257_v1  ;;  %v290_v10 = vpop.f32.mrf.mxu1 }
 0x1d7   :  { %327 = vmatpush.msrb.mxu2 %v254_v63 }
 0x1d9   :  { %328 = vmatpush.msrb.mxu2 %v251_v61 }
 0x1db   :  { %329 = vmatpush.msrb.mxu2 %v248_v59 }
 0x1dc   :  { %476 = vmatmul.msk.f32.vlgmr.msrb.gmra.mxu2 %vm260_vm1, %v219_v4 }
 0x1dd   :  { %v293_v12 = vpop.f32.mrf.mxu1 }
 0x1e4   :  { %477 = vmatmul.msk.f32.gmra.mxu2 %vm260_vm1, %v220_v6 }
 0x1e5   :  { %v296_v14 = vpop.f32.mrf.mxu1 }
 0x1ec   :  { %478 = vmatmul.msk.f32.gmra.mxu2 %vm260_vm1, %v221_v8 }
 0x1ed   :  { %v299_v17 = vpop.f32.mrf.mxu1 }
 0x1f4   :  { %479 = vmatmul.msk.f32.gmra.mxu2 %vm260_vm1, %v222_v9 }
 0x25f   :  { %v331_v11 = vpop.f32.mrf.mxu2 }
 0x260   :  { %v332_v23 = vadd.f32 %v331_v11, %v290_v10 }
 0x262   :  { %v363_v31 = vadd.f32 %v346_v29, %v332_v23 }
 0x264   :  { %v367_v33 = vmax.f32 %v363_v31, 0.0 }
 0x267   :  { %v334_v13 = vpop.f32.mrf.mxu2 }
 0x268   :  { %v335_v20 = vadd.f32 %v334_v13, %v293_v12 }
 0x26a   :  { %v364_v28 = vadd.f32 %v351_v26, %v335_v20 }
 0x26c   :  { %v368_v32 = vmax.f32 %v364_v28, 0.0 }
 0x26f   :  { %v337_v15 = vpop.f32.mrf.mxu2 }
 0x270   :  { %v338_v18 = vadd.f32 %v337_v15, %v296_v14 }
 0x272   :  { %v365_v24 = vadd.f32 %v356_v22, %v338_v18 }
 0x274   :  { %v369_v30 = vmax.f32 %v365_v24, 0.0 }
 0x277   :  { %v340_v19 = vpop.f32.mrf.mxu2 }
 0x278   :  { %v341_v21 = vadd.f32 %v340_v19, %v299_v17 }
 0x27a   :  { %v366_v25 = vadd.f32 %v361_v16, %v341_v21 }
 0x27c   :  { %v370_v27 = vmax.f32 %v366_v25, 0.0 }
 0x27e   :  { %389 = vmatpush.msrb.mxu0 %v370_v27 }
 0x280   :  { %390 = vmatpush.msrb.mxu0 %v369_v30 }
 0x282   :  { %391 = vmatpush.msrb.mxu0 %v368_v32 }
 0x284   :  { %392 = vmatpush.msrb.mxu0 %v367_v33 }
 0x285   :  { %480 = vmatmul.msk.f32.vlgmr.msrb.gmra.mxu0 %vm260_vm1, %v371_v34 }
 0x286   :  { %412 = vmatpush.msra.mxu0 %v370_v27 }
 0x288   :  { %413 = vmatpush.msra.mxu0 %v369_v30 }
 0x28a   :  { %414 = vmatpush.msra.mxu0 %v368_v32 }
 0x28c   :  { %415 = vmatpush.msra.mxu0 %v367_v33 }
 0x28d   :  { %481 = vmatmul.msk.f32.vlgmr.msra.gmra.mxu0 %vm260_vm1, %v372_v35 }
 0x302   :  { %v394_v36 = vpop.f32.mrf.mxu0 }
 0x303   :  { %436 = vmatmul.f32.vlgmr.msrb.gmra.mxu3 %v394_v36 }
 0x30a   :  { %v417_v37 = vpop.f32.mrf.mxu0 }
 0x386   :  { %v437_v38 = vpop.f32.mrf.mxu3 }
 0x387   :  { %v438_v39 = vadd.f32 %v437_v38, %v417_v37 }
 0x389   :  { %v445_v41 = vadd.f32 %v443_v40, %v438_v39 }
 0x38b   :  { %446 = vst [vmem:[#allocation5] sm:$0xff] %v445_v41 }
 0x38c   :  { %457 = dma.vmem_to_hbm [thread:$0]  %s453_s30, 128, %s455_s12, [#allocation4]  }
 0x38d   :  { %540 = dma.done.wait [#allocation4], 128  }
 0x38e   :  { %541 = vsyncadd [#allocation4], 4294967168 }
 0x38f   :  { %462 = vsyncpa [#allocation3], 1 }
 0x390   :  { %463 = vsyncpa [#allocation4], 1 }

</bundles_post_ra>
